<compile_context>
chip_gen: v7x
topology: tpu7x:2x2x1
jax: 0.10.0
libtpu: 0.0.40
codegen_flags: <defaults>
</compile_context>

<pallas_src>
import functools

import jax
import jax.numpy as jnp
from jax.experimental import pallas as pl
from jax.experimental.pallas import tpu as pltpu


def _accumulate(acc_ref, loss):
    """Fold a (tb, tn) loss tile into the (rows, tn) accumulator (VPU adds only)."""
    rows, tn = acc_ref.shape
    tb = loss.shape[0]
    if rows == tb:
        acc_ref[...] += loss
    else:
        acc_ref[...] += loss.reshape(tb // rows, rows, tn).sum(axis=0)


def _bce_kernel(*refs, has_mask, has_pw, pad_ind, tile_n):
    """Accumulates masked BCE-with-logits partial sums per batch tile.

    refs = (x_ref, y_ref, [m_ref], [pwm1_ref], out_ref, acc_ref)
    Grid axis 0 = batch tiles (parallel), axis 1 = class tiles (reduction).
    acc_ref is a VMEM scratch accumulator; out_ref (a (1, 128) lane-dense block)
    gets the batch-tile sum in lane 0 only at the last class tile.
    """
    it = iter(refs)
    x_ref = next(it)
    y_ref = next(it)
    m_ref = next(it) if has_mask else None
    pwm1_ref = next(it) if has_pw else None
    out_ref = next(it)
    acc_ref = next(it)

    j = pl.program_id(1)

    @pl.when(j == 0)
    def _init():
        acc_ref[...] = jnp.zeros_like(acc_ref)

    x = x_ref[...].astype(jnp.float32)          # (tb, tn) logits
    y = y_ref[...].astype(jnp.float32)          # (tb, tn) 0/1 targets

    # Numerically stable log(1 + exp(-|x|)) (log-sum-exp trick), identical to
    # torch.nn.functional.binary_cross_entropy_with_logits.
    # TODO(synk): on v7x a bf16 exp/log1p would roughly double EUP throughput,
    # but drops the softplus term to ~3 decimal digits, so it is not used here.
    log_term = jnp.log1p(jnp.exp(-jnp.abs(x)))

    if has_pw:
        # PyTorch: (1-y)*x + (1 + (pw-1)*y) * (log1p(exp(-|x|)) + max(-x, 0)).
        pwm1 = pwm1_ref[...].astype(jnp.float32)        # (1, tn) = pos_weight - 1
        log_weight = 1.0 + pwm1 * y
        loss = (1.0 - y) * x + log_weight * (log_term + jnp.maximum(-x, 0.0))
    else:
        # Identity: (1-y)*x + max(-x, 0) == relu(x) - y*x  (fewer VALU ops/elem).
        loss = jnp.maximum(x, 0.0) - y * x + log_term

    if has_mask:
        loss = loss * m_ref[...].astype(jnp.float32)

    if pad_ind is not None:
        # Only the single class tile containing pad_ind pays for the
        # iota/compare/select; every other grid step accumulates directly.
        pad_tile = pad_ind // tile_n
        pad_col = pad_ind % tile_n

        @pl.when(j == pad_tile)
        def _acc_pad_tile():
            col = jax.lax.broadcasted_iota(jnp.int32, (1, tile_n), 1)
            _accumulate(acc_ref, jnp.where(col == pad_col, 0.0, loss))

        @pl.when(j != pad_tile)
        def _acc_other():
            _accumulate(acc_ref, loss)
    else:
        _accumulate(acc_ref, loss)

    @pl.when(j == pl.num_programs(1) - 1)
    def _finalize():
        total = jnp.sum(acc_ref[...])                   # single XLU reduce / tile
        lane = jax.lax.broadcasted_iota(jnp.int32, (1, 128), 1)
        out_ref[...] = jnp.where(lane == 0, total, 0.0)


def _choose_tile(dim, target, quantum):
    """Largest divisor of `dim` <= target, preferring quantum-aligned divisors."""
    target = max(1, min(target, dim))
    best_any = 1
    for cand in range(target, 0, -1):
        if dim % cand:
            continue
        if cand % quantum == 0:
            return cand
        if best_any == 1:
            best_any = cand
    return best_any


def _vmem_capacity_bytes():
    """Physical per-core VMEM; conservative fallback = 64 MiB (v7x per TC)."""
    try:
        cap = getattr(pltpu.get_tpu_info(), "vmem_capacity_bytes", None)
        if cap:
            return int(cap)
    except Exception:
        pass
    return 64 * 1024 * 1024


def bce_with_logits_loss(logits, targets, mask=None, pos_weight=None,
                         pad_ind=None, reduction='mean',
                         tile_b=256, tile_n=4096,
                         assume_binary_targets=True):
    """JAX/Pallas equivalent of BCEWithLogitsLoss(...)(logits, targets, mask)."""
    assert logits.ndim == 2 and logits.shape == targets.shape
    B, N = logits.shape
    if pad_ind is not None:
        assert 0 <= pad_ind < N

    # ---- Tile selection ------------------------------------------------------
    # Keep >= 2 tiles on the "parallel" batch axis whenever possible so v7x's
    # second TensorCore gets work; v5e/v6e (1 TC) are unaffected.
    tb_target = min(tile_b, B // 2) if B >= 16 else min(tile_b, B)
    tile_b = _choose_tile(B, tb_target, 8)
    tile_n = _choose_tile(N, min(tile_n, N), 128)
    if tile_n % 128 != 0 and tile_n != N:
        tile_n = N                      # lane-alignment fallback (always valid)
    if tile_b % 8 != 0 and tile_b != B:
        tile_b = B

    num_row_tiles = B // tile_b
    num_col_tiles = N // tile_n

    has_mask = mask is not None
    has_pw = pos_weight is not None

    # ---- Inputs --------------------------------------------------------------
    # Binary 0/1 targets (and boolean mask) are exact in bf16 => half the HBM
    # traffic. Soft targets keep their original dtype.
    # TODO(synk): stream targets/mask as int8 on v5e/v6e for another ~15-25%.
    if assume_binary_targets and targets.dtype == jnp.float32:
        targets_stream = targets.astype(jnp.bfloat16)
    else:
        targets_stream = targets

    inputs = [logits, targets_stream]
    in_specs = [
        pl.BlockSpec((tile_b, tile_n), lambda i, j: (i, j)),   # logits
        pl.BlockSpec((tile_b, tile_n), lambda i, j: (i, j)),   # targets
    ]
    if has_mask:
        inputs.append(mask.astype(jnp.bfloat16))
        in_specs.append(pl.BlockSpec((tile_b, tile_n), lambda i, j: (i, j)))
    if has_pw:
        # Pre-subtract 1 on the host; kernel computes log_weight = 1 + pwm1 * y.
        inputs.append(pos_weight.reshape(1, N).astype(jnp.float32) - 1.0)
        in_specs.append(pl.BlockSpec((1, tile_n), lambda i, j: (0, j)))

    if reduction == 'mean':
        denom = float(B * N)
    elif reduction == 'sum':
        denom = 1.0
    else:
        # TODO(synk): 'none' / 'custom' reductions return non-scalar shapes; only
        # the scalar reductions are implemented in-kernel here.
        raise NotImplementedError(reduction)

    acc_rows = 8 if tile_b % 8 == 0 else tile_b

    # ---- Generation-aware VMEM limit ------------------------------------------
    bytes_per_elem = (jnp.dtype(logits.dtype).itemsize +
                      jnp.dtype(targets_stream.dtype).itemsize +
                      (2 if has_mask else 0))
    footprint = 2 * tile_b * tile_n * bytes_per_elem        # double-buffered streams
    footprint += (2 * tile_n * 4) if has_pw else 0          # pos_weight row
    footprint += acc_rows * tile_n * 4                      # accumulator scratch
    footprint += 2 * 128 * 4                                # partial-sum output block
    vmem_cap = _vmem_capacity_bytes()
    vmem_limit = max(32 << 20, min(footprint + (8 << 20), int(0.75 * vmem_cap)))

    kernel = functools.partial(_bce_kernel, has_mask=has_mask, has_pw=has_pw,
                               pad_ind=pad_ind, tile_n=tile_n)

    partial_sums = pl.pallas_call(
        kernel,
        out_shape=jax.ShapeDtypeStruct((1, num_row_tiles * 128), jnp.float32),
        grid_spec=pltpu.PrefetchScalarGridSpec(
            num_scalar_prefetch=0,
            grid=(num_row_tiles, num_col_tiles),
            in_specs=in_specs,
            out_specs=pl.BlockSpec((1, 128), lambda i, j: (0, i)),
            scratch_shapes=[pltpu.VMEM((acc_rows, tile_n), jnp.float32)],
        ),
        compiler_params=pltpu.CompilerParams(
            dimension_semantics=("parallel", "arbitrary"),
            vmem_limit_bytes=int(vmem_limit)),
    )(*inputs)

    return jnp.sum(partial_sums) / denom


def _reference(logits, targets, mask=None, pos_weight=None, pad_ind=None,
               reduction='mean'):
    x = logits.astype(jnp.float32)
    y = targets.astype(jnp.float32)
    sp = jnp.log1p(jnp.exp(-jnp.abs(x))) + jnp.maximum(-x, 0.0)
    if pos_weight is not None:
        lw = 1.0 + (pos_weight.reshape(1, -1).astype(jnp.float32) - 1.0) * y
    else:
        lw = 1.0
    loss = (1.0 - y) * x + lw * sp
    if pad_ind is not None:
        loss = loss.at[:, pad_ind].set(0.0)
    if mask is not None:
        loss = jnp.where(mask, loss, 0.0)
    return loss.mean() if reduction == 'mean' else loss.sum()


if __name__ == "__main__":
    key = jax.random.PRNGKey(0)
    k1, k2, k3, k4, k5 = jax.random.split(key, 5)

    # 1) Default module config: weight=None, pos_weight=None, reduction='mean',
    #    pad_ind=None, mask=None (no mask / pos_weight streams are DMA'd).
    B, N = 8, 256  # batch_size x output_size (small, tile-friendly)
    logits = jax.random.normal(k1, (B, N), dtype=jnp.float32) * 2.0
    targets = (jax.random.uniform(k2, (B, N)) > 0.8).astype(jnp.float32)
    out = jax.block_until_ready(bce_with_logits_loss(logits, targets))
    ref = _reference(logits, targets)
    assert jnp.allclose(out, ref, rtol=1e-5, atol=1e-5), (out, ref)

    # 2) Full-featured path: mask + pos_weight + pad_ind, reduction='sum'.
    mask = jax.random.uniform(k3, (B, N)) > 0.3
    pos_weight = jnp.linspace(0.5, 2.0, N, dtype=jnp.float32)
    out2 = jax.block_until_ready(
        bce_with_logits_loss(logits, targets, mask=mask, pos_weight=pos_weight,
                             pad_ind=3, reduction='sum'))
    ref2 = _reference(logits, targets, mask=mask, pos_weight=pos_weight,
                      pad_ind=3, reduction='sum')
    assert jnp.allclose(out2, ref2, rtol=1e-5, atol=1e-4), (out2, ref2)

    # 3) Multi-tile path: 2 parallel batch tiles x 4 class tiles, with a
    #    @pl.when-gated pad_ind that only one class tile pays for.
    B2, N2 = 32, 512
    logits2 = jax.random.normal(k4, (B2, N2), dtype=jnp.float32) * 2.0
    targets2 = (jax.random.uniform(k5, (B2, N2)) > 0.9).astype(jnp.float32)
    out3 = jax.block_until_ready(
        bce_with_logits_loss(logits2, targets2, pad_ind=200, reduction='mean',
                             tile_n=128))
    ref3 = _reference(logits2, targets2, pad_ind=200, reduction='mean')
    assert jnp.allclose(out3, ref3, rtol=1e-5, atol=1e-5), (out3, ref3)

    print("KERNEL_OK")
</pallas_src>

<mosaic_0001>
module attributes {stable_mosaic.version = 11 : i64} {
  func.func @_bce_kernel(%arg0: i32, %arg1: i32, %arg2: memref<8x256xf32, #tpu.memory_space<vmem>>, %arg3: memref<8x256xbf16, #tpu.memory_space<vmem>>, %arg4: memref<1x128xf32, #tpu.memory_space<vmem>>, %arg5: memref<8x256xf32, #tpu.memory_space<vmem>>) attributes {dimension_semantics = [#tpu.dimension_semantics<parallel>, #tpu.dimension_semantics<arbitrary>], iteration_bounds = array<i64: 1, 1>, scalar_prefetch = 0 : i64, scratch_operands = 1 : i64, tpu.core_type = #tpu.core_type<tc>, window_params = [{transform_indices = @transform_0, window_bounds = array<i64: 8, 256>}, {transform_indices = @transform_1, window_bounds = array<i64: 8, 256>}, {transform_indices = @transform_2, window_bounds = array<i64: 1, 128>}]} {
    %c0_i32 = arith.constant 0 : i32
    %0 = arith.cmpi eq, %arg1, %c0_i32 : i32
    %1 = arith.extui %0 : i1 to i32
    %c0_i32_0 = arith.constant 0 : i32
    %2 = arith.cmpi ne, %1, %c0_i32_0 : i32
    scf.if %2 {
      %cst_11 = arith.constant 0.000000e+00 : f32
      %22 = vector.broadcast %cst_11 : f32 to vector<8x256xf32>
      %c0_12 = arith.constant 0 : index
      %c0_13 = arith.constant 0 : index
      %23 = vector.load %arg5[%c0_12, %c0_13] : memref<8x256xf32, #tpu.memory_space<vmem>>, vector<8x256xf32>
      tpu.vector_store %arg5[%c0_12, %c0_13], %22 {strides = array<i32>} : memref<8x256xf32, #tpu.memory_space<vmem>>, vector<8x256xf32>,
    } else {
    }
    %c0 = arith.constant 0 : index
    %c0_1 = arith.constant 0 : index
    %3 = vector.load %arg2[%c0, %c0_1] : memref<8x256xf32, #tpu.memory_space<vmem>>, vector<8x256xf32>
    %c0_2 = arith.constant 0 : index
    %c0_3 = arith.constant 0 : index
    %4 = vector.load %arg3[%c0_2, %c0_3] : memref<8x256xbf16, #tpu.memory_space<vmem>>, vector<8x256xbf16>
    %5 = arith.extf %4 : vector<8x256xbf16> to vector<8x256xf32>
    %6 = math.absf %3 : vector<8x256xf32>
    %cst = arith.constant 0.000000e+00 : f32
    %7 = vector.broadcast %cst : f32 to vector<8x256xf32>
    %8 = arith.subf %7, %6 : vector<8x256xf32>
    %9 = math.exp %8 : vector<8x256xf32>
    %10 = math.log1p %9 : vector<8x256xf32>
    %cst_4 = arith.constant 0.000000e+00 : f32
    %11 = vector.broadcast %cst_4 : f32 to vector<8x256xf32>
    %12 = arith.maximumf %3, %11 : vector<8x256xf32>
    %13 = arith.mulf %5, %3 : vector<8x256xf32>
    %14 = arith.subf %12, %13 : vector<8x256xf32>
    %15 = arith.addf %14, %10 : vector<8x256xf32>
    %c0_5 = arith.constant 0 : index
    %c0_6 = arith.constant 0 : index
    %16 = vector.load %arg5[%c0_5, %c0_6] : memref<8x256xf32, #tpu.memory_space<vmem>>, vector<8x256xf32>
    %17 = arith.addf %16, %15 : vector<8x256xf32>
    %c0_7 = arith.constant 0 : index
    %c0_8 = arith.constant 0 : index
    %18 = vector.load %arg5[%c0_7, %c0_8] : memref<8x256xf32, #tpu.memory_space<vmem>>, vector<8x256xf32>
    tpu.vector_store %arg5[%c0_7, %c0_8], %17 {strides = array<i32>} : memref<8x256xf32, #tpu.memory_space<vmem>>, vector<8x256xf32>,
    %c0_i32_9 = arith.constant 0 : i32
    %19 = arith.cmpi eq, %arg1, %c0_i32_9 : i32
    %20 = arith.extui %19 : i1 to i32
    %c0_i32_10 = arith.constant 0 : i32
    %21 = arith.cmpi ne, %20, %c0_i32_10 : i32
    scf.if %21 {
      %c0_11 = arith.constant 0 : index
      %c0_12 = arith.constant 0 : index
      %22 = vector.load %arg5[%c0_11, %c0_12] : memref<8x256xf32, #tpu.memory_space<vmem>>, vector<8x256xf32>
      %23 = vector.shape_cast %22 : vector<8x256xf32> to vector<1x8x256xf32>
      %cst_13 = arith.constant dense<0.000000e+00> : vector<1xf32>
      %24 = vector.multi_reduction <add>, %23, %cst_13 [1, 2] : vector<1x8x256xf32> to vector<1xf32>
      %25 = vector.shape_cast %24 : vector<1xf32> to vector<1x1x1xf32>
      %26 = vector.extract %25[0, 0, 0] : f32 from vector<1x1x1xf32>
      %27 = tpu.iota {dimensions = array<i32: 1>} : vector<1x128xi32>
      %c0_i32_14 = arith.constant 0 : i32
      %28 = vector.broadcast %c0_i32_14 : i32 to vector<1x128xi32>
      %29 = arith.cmpi eq, %27, %28 : vector<1x128xi32>
      %cst_15 = arith.constant 0.000000e+00 : f32
      %30 = vector.broadcast %26 : f32 to vector<1x128xf32>
      %31 = vector.broadcast %cst_15 : f32 to vector<1x128xf32>
      %32 = arith.select %29, %30, %31 : vector<1x128xi1>, vector<1x128xf32>
      %c0_16 = arith.constant 0 : index
      %c0_17 = arith.constant 0 : index
      %33 = vector.load %arg4[%c0_16, %c0_17] : memref<1x128xf32, #tpu.memory_space<vmem>>, vector<1x128xf32>
      tpu.vector_store %arg4[%c0_16, %c0_17], %32 {strides = array<i32>} : memref<1x128xf32, #tpu.memory_space<vmem>>, vector<1x128xf32>,
    } else {
    }
    return
  }
  func.func @transform_0(%arg0: i32, %arg1: i32) -> (i32, i32) {
    %c0_i32 = arith.constant 0 : i32
    return %arg0, %arg1 : i32, i32
  }
  func.func @transform_1(%arg0: i32, %arg1: i32) -> (i32, i32) {
    %c0_i32 = arith.constant 0 : i32
    return %arg0, %arg1 : i32, i32
  }
  func.func @transform_2(%arg0: i32, %arg1: i32) -> (i32, i32) {
    %c0_i32 = arith.constant 0 : i32
    %c0_i32_0 = arith.constant 0 : i32
    return %c0_i32, %arg0 : i32, i32
  }
}

</mosaic_0001>

<bundles_post_ra>
// kernel: tpu_custom_call.1
= control target key start
LH: loop header
LB: loop body
LE: loop exit
PB: predicated region body
PF: predicated region fallthrough
CT: control target
= control target key end

     0   :  { %7 = vsyncpa [#allocation4], 0  ;;  %s263_s0 = inlined_call_operand.hbm [shape: f32[8,256], index: 0, kind: input, shape index: {}]   ;;  %s264_s1 = inlined_call_operand.hbm [shape: bf16[8,256], index: 1, kind: input, shape index: {}]   ;;  %s265_s2 = inlined_call_operand.hbm [shape: f32[1,128], index: 2, kind: output, shape index: {}]  }
   0x1   :  { %8 = vsyncpa [#allocation7], 0 }
   0x2   :  { %9 = vsyncpa [#allocation5], 0  ;;  %s209_s9 = smov [#allocation3]   ;;  %s210_s11 = smov [#allocation6]  }
   0x3   :  { %s16_s10 = sshll.u32 %s209_s9, 4  ;;  %s26_s12 = sshll.u32 %s210_s11, 4  ;;  %s17_s10 = int_to_ptr.vmem [resolvable:$true] %s16_s10  ;;  %s27_s12 = int_to_ptr.vmem [resolvable:$true] %s26_s12 }
   0x4   :  { %s137_s15 = scalar_lea.hbm %s263_s0, 256 }
   0x5   :  { %p138_p0 = scmp.ne.s32.totalorder %s263_s0, %s137_s15  ;;  %p141_p1 = scmp.lt.u32.totalorder %s137_s15, %s263_s0 }
   0x7   :  { %p143_p2 = pnand %p141_p1, %p138_p0 }
   0x9   :  { %146 = shalt.err (!%p143_p2)
}
   0xa   :  { %s147_s20 = scalar_lea.vmem %s17_s10, 256  ;;  %p152_p4 = scmp.lt.s32.totalorder %s17_s10, %s17_s10 }
   0xb   :  { %p148_p3 = scmp.ne.s32.totalorder %s17_s10, %s147_s20  ;;  %p153_p5 = scmp.lt.s32.totalorder %s147_s20, %s147_s20 }
   0xd   :  { %p154_p6 = por %p153_p5, %p152_p4 }
   0xf   :  { %p155_p7 = pnand %p154_p6, %p148_p3 }
  0x11   :  { %158 = shalt.err (!%p155_p7)
}
  0x12   :  { %19 = dma.hbm_to_vmem [thread:$0]  %s263_s0, 256, %s17_s10, [#allocation4]  }
  0x13   :  { %s159_s25 = scalar_lea.hbm %s264_s1, 128 }
  0x14   :  { %p160_p8 = scmp.ne.s32.totalorder %s264_s1, %s159_s25  ;;  %p163_p9 = scmp.lt.u32.totalorder %s159_s25, %s264_s1 }
  0x16   :  { %p165_p10 = pnand %p163_p9, %p160_p8 }
  0x18   :  { %168 = shalt.err (!%p165_p10)
}
  0x19   :  { %s169_s30 = scalar_lea.vmem %s27_s12, 128  ;;  %p174_p12 = scmp.lt.s32.totalorder %s27_s12, %s27_s12 }
  0x1a   :  { %p170_p11 = scmp.ne.s32.totalorder %s27_s12, %s169_s30  ;;  %p175_p13 = scmp.lt.s32.totalorder %s169_s30, %s169_s30 }
  0x1c   :  { %p176_p0 = por %p175_p13, %p174_p12 }
  0x1e   :  { %p177_p1 = pnand %p176_p0, %p170_p11 }
  0x20   :  { %180 = shalt.err (!%p177_p1)
}
  0x21   :  { %29 = dma.hbm_to_vmem [thread:$0]  %s264_s1, 128, %s27_s12, [#allocation7]  }
  0x22   :  { %203 = dma.done.wait [#allocation4], 256  }
  0x23   :  { %204 = vsyncadd [#allocation4], 4294967040 }
  0x24   :  { %205 = dma.done.wait [#allocation7], 128  }
  0x25   :  { %206 = vsyncadd [#allocation7], 4294967168  ;;  %v42_v0 = vld [vmem:[#allocation3] sm:$0xff]  ;;  %v43_v1 = vld [vmem:[#allocation3 + $0x8] sm:$0xff]  ;;  %v102_v45 = vlaneseq  ;;  %s211_s1 = smov [#allocation8]  }
  0x26   :  { %v47_v2 = vand.u32 2147483647, %v42_v0  ;;  %v48_v3 = vand.u32 2147483647, %v43_v1  ;;  %v44_v11 = vld [vmem:[#allocation6] sm:$0xff]  ;;  %v73_v20 = vmax.f32 %v42_v0, 0.0 }
  0x27   :  { %v45_v14 = vunpack.c.l.bf16 %v44_v11  ;;  %v46_v16 = vunpack.c.h.bf16 %v44_v11  ;;  %v74_v23 = vmax.f32 %v43_v1, 0.0  ;;  %v103_v46 = vand.u32 127, %v102_v45  ;;  %s114_s4 = sshll.u32 %s211_s1, 4  ;;  %s115_s4 = int_to_ptr.vmem [resolvable:$true] %s114_s4 }
  0x28   :  { %v49_v4 = vsub.f32 0.0, %v47_v2  ;;  %v50_v5 = vsub.f32 0.0, %v48_v3  ;;  %s181_s6 = scalar_lea.vmem %s115_s4, 16  ;;  %s185_s7 = scalar_lea.vmem %s115_s4, 32 }
  0x29   :  { %v75_v21 = vmul.f32 %v45_v14, %v42_v0  ;;  %v76_v24 = vmul.f32 %v46_v16, %v43_v1  ;;  %vm104_vm2 = vcmp.eq.s32.totalorder %v103_v46, 0  ;;  %p182_p2 = scmp.ne.s32.totalorder %s115_s4, %s181_s6  ;;  %p186_p3 = scmp.lt.s32.totalorder %s115_s4, %s115_s4 }
  0x2a   :  { %v51_v6 = vmul.f32 1.442695, %v49_v4  ;;  %v53_v7 = vmul.f32 1.442695, %v50_v5  ;;  %p187_p4 = scmp.lt.s32.totalorder %s185_s7, %s181_s6 }
  0x2b   :  { %v77_v28 = vsub.f32 %v73_v20, %v75_v21  ;;  %v78_v31 = vsub.f32 %v74_v23, %v76_v24 }
  0x2c   :  { %129 = vpow2.f32 %v51_v6  ;;  %p188_p5 = por %p187_p4, %p186_p3 }
  0x2d   :  { %131 = vpow2.f32 %v53_v7 }
  0x2e   :  { %p189_p6 = pnand %p188_p5, %p182_p2 }
  0x36   :  { %v130_v8 = vpop.eup %129 }
  0x37   :  { %v132_v9 = vpop.eup %131  ;;  %v55_v10 = vadd.f32 1.0, %v130_v8  ;;  %v58_v13 = vmul.f32 -0.5, %v130_v8  ;;  %v61_v18 = vand.u32 2147483647, %v130_v8 }
  0x38   :  { %v64_v12 = vadd.f32 1.0, %v132_v9  ;;  %v67_v15 = vmul.f32 -0.5, %v132_v9  ;;  %v70_v22 = vand.u32 2147483647, %v132_v9 }
  0x39   :  { %133 = vlog2.f32 %v55_v10  ;;  %v59_v17 = vadd.f32 1.0, %v58_v13  ;;  %vm62_vm0 = vcmp.lt.f32.partialorder %v61_v18, 0.0004427343 }
  0x3a   :  { %135 = vlog2.f32 %v64_v12  ;;  %v68_v19 = vadd.f32 1.0, %v67_v15  ;;  %vm71_vm1 = vcmp.lt.f32.partialorder %v70_v22, 0.0004427343 }
  0x3b   :  { %v60_v25 = vmul.f32 %v130_v8, %v59_v17 }
  0x3c   :  { %v69_v27 = vmul.f32 %v132_v9, %v68_v19 }
  0x43   :  { %v134_v26 = vpop.eup %133 }
  0x44   :  { %v136_v29 = vpop.eup %135  ;;  %v57_v30 = vmul.f32 0.6931472, %v134_v26 }
  0x45   :  { %v66_v32 = vmul.f32 0.6931472, %v136_v29 }
  0x46   :  { %v63_v33 = vsel %vm62_vm0, %v60_v25, %v57_v30 }
  0x47   :  { %v72_v34 = vsel %vm71_vm1, %v69_v27, %v66_v32  ;;  %v79_v35 = vadd.f32 %v77_v28, %v63_v33 }
  0x48   :  { %v80_v36 = vadd.f32 %v78_v31, %v72_v34 }
  0x4a   :  { %v92_v37 = vadd.f32 %v80_v36, %v79_v35 }
  0x4c   :  { %93 = vadd.xlane.f32.xlu0 %v92_v37 }
  0xd9   :  { %v94_v38 = vpop.xlane.xlu0 %93 }
  0xda   :  { %v95_v39 = vrot.slane %v94_v38, 4 }
  0xdc   :  { %v96_v40 = vadd.f32 %v95_v39, %v94_v38 }
  0xde   :  { %v97_v41 = vrot.slane %v96_v40, 2 }
  0xe0   :  { %v98_v42 = vadd.f32 %v97_v41, %v96_v40 }
  0xe2   :  { %v99_v43 = vrot.slane %v98_v42, 1 }
  0xe4   :  { %v100_v44 = vadd.f32 %v99_v43, %v98_v42 }
  0xe6   :  { %124 = vpush %v100_v44 }
 0x117   :  { %s125_s5 = spop %124 }
 0x118   :  { %v105_v47 = vstv %s125_s5 }
 0x119   :  { %v106_v48 = vsel %vm104_vm2, %v105_v47, 0.0 }
 0x11a   :  { %107 = vst [vmem:[#allocation8] sm:$0x1] %v106_v48 }
 0x11b   :  { %192 = shalt.err (!%p189_p6)
}
 0x11c   :  { %s193_s10 = scalar_lea.hbm %s265_s2, 16 }
 0x11d   :  { %p194_p7 = scmp.ne.s32.totalorder %s265_s2, %s193_s10  ;;  %p197_p8 = scmp.lt.u32.totalorder %s193_s10, %s265_s2 }
 0x11f   :  { %p199_p9 = pnand %p197_p8, %p194_p7 }
 0x121   :  { %202 = shalt.err (!%p199_p9)
}
 0x122   :  { %117 = dma.vmem_to_hbm [thread:$0]  %s115_s4, 16, %s265_s2, [#allocation5]  }
 0x123   :  { %207 = dma.done.wait [#allocation5], 16  }
 0x124   :  { %208 = vsyncadd [#allocation5], 4294967280 }
 0x125   :  { %121 = vsyncpa [#allocation4], 1 }
 0x126   :  { %122 = vsyncpa [#allocation7], 1 }
 0x127   :  { %123 = vsyncpa [#allocation5], 1 }

</bundles_post_ra>
